<compile_context>
chip_gen: v7x
topology: tpu7x:2x2x1
jax: 0.10.0
libtpu: 0.0.40
codegen_flags: <defaults>
</compile_context>

<pallas_src>
from functools import partial

import jax
import jax.numpy as jnp
from jax.experimental import pallas as pl
from jax.experimental.pallas import tpu as pltpu


# ----------------------------- Pallas kernel -------------------------------

def _vae_loss_kernel(xp_ref, x_ref, mu_ref, logvar_ref, beta_ref, nll_ref, wkl_ref):
    i = pl.program_id(0)
    last = pl.num_programs(0) - 1

    @pl.when(i == 0)
    def _init():
        nll_ref[...] = jnp.zeros_like(nll_ref)
        wkl_ref[...] = jnp.zeros_like(wkl_ref)

    # Streaming reconstruction term: per-tile sum of squared differences,
    # accumulated into the resident (1,1) output block (f32 accumulation,
    # inputs upcast in-kernel so HBM carries the native dtype).
    diff = xp_ref[...].astype(jnp.float32) - x_ref[...].astype(jnp.float32)   # (TM, D)
    nll_ref[...] += jnp.sum(diff * diff, axis=(0, 1), keepdims=True)          # (1, 1)

    # KL term + beta scaling: computed exactly once, on the last grid step.
    @pl.when(i == last)
    def _finalize():
        mu = mu_ref[...].astype(jnp.float32)                                  # (N, L)
        lv = logvar_ref[...].astype(jnp.float32)                              # (N, L)
        per_sample = jnp.sum(1.0 + lv - mu * mu - jnp.exp(lv),
                             axis=1, keepdims=True)                           # (N, 1)
        n = mu_ref.shape[0]
        kl = (-0.5 / n) * jnp.sum(per_sample, axis=(0, 1), keepdims=True)     # (1, 1)
        wkl_ref[...] = beta_ref[0] * kl                                       # beta from SMEM


# ----------------------------- wrapper --------------------------------------

def _row_tile(n, d, itemsize, target_bytes=2 * 1024 * 1024):
    """Largest multiple-of-8 row tile that divides n and keeps one streamed
    buffer under ~2 MiB (=> <=~8 MiB double-buffered for both inputs, safe on
    v5e/v6e/v7x default scoped VMEM). Falls back to the full array if no such
    divisor exists (correct, just untiled)."""
    if n <= 8:
        return n
    max_tm = min(n, max(8, target_bytes // max(1, d * itemsize)))
    best = None
    tm = 8
    while tm <= max_tm:
        if n % tm == 0:
            best = tm
        tm += 8
    return best if best is not None else n


@partial(jax.jit, static_argnames=("tile_rows",))
def vae_loss_forward(x_pred, mu, logvar, x, current_beta, tile_rows=None):
    """Fused VAE loss. Returns (nll, current_beta * kl) as f32 scalars."""
    n = x_pred.shape[0]
    xp2 = x_pred.reshape(n, -1)          # torch.flatten(x_pred, 1) -- native dtype
    x2 = x.reshape(n, -1)                # torch.flatten(x, 1)      -- native dtype
    d = xp2.shape[1]

    tm = tile_rows if tile_rows is not None else _row_tile(
        n, d, jnp.dtype(xp2.dtype).itemsize)
    assert n % tm == 0, f"row tile {tm} must divide batch {n}"
    grid = (n // tm,)

    beta_arr = jnp.asarray(current_beta, jnp.float32).reshape(1)

    nll, wkl = pl.pallas_call(
        _vae_loss_kernel,
        grid=grid,
        in_specs=[
            pl.BlockSpec((tm, d), lambda i: (i, 0)),          # x_pred rows (streamed)
            pl.BlockSpec((tm, d), lambda i: (i, 0)),          # x      rows (streamed)
            pl.BlockSpec(mu.shape, lambda i: (0, 0)),         # mu     (resident)
            pl.BlockSpec(logvar.shape, lambda i: (0, 0)),     # logvar (resident)
            pl.BlockSpec(memory_space=pltpu.MemorySpace.SMEM),  # beta scalar
        ],
        out_specs=(pl.BlockSpec((1, 1), lambda i: (0, 0)),    # nll accumulator
                   pl.BlockSpec((1, 1), lambda i: (0, 0))),   # weighted kl
        out_shape=(jax.ShapeDtypeStruct((1, 1), jnp.float32),
                   jax.ShapeDtypeStruct((1, 1), jnp.float32)),
        compiler_params=pltpu.CompilerParams(
            dimension_semantics=("arbitrary",)),              # reduction axis
    )(xp2, x2, mu, logvar, beta_arr)
    return nll[0, 0], wkl[0, 0]


class VAELoss:
    """VAE loss with beta annealing (host-side state, fused Pallas forward)."""

    def __init__(self, beta: float, epoch_resets: int, num_resets: int):
        self.beta = beta
        self.num_resets = num_resets
        self.current_beta = 0.0
        self.current_time = 0
        self.epoch_resets = epoch_resets
        self.beta_rate = self.beta / self.epoch_resets

    def update_beta(self):
        # TODO(synk): host-side Python state mutation (matches the PyTorch
        # module exactly); no device kernel needed for this.
        self.current_beta += self.beta_rate
        if self.current_beta > self.beta:
            if self.current_time >= self.num_resets:
                self.current_beta = self.beta
            elif self.current_time < self.num_resets:
                self.current_beta = 0
                self.current_time += 1

    def forward(self, x_pred, mu, logvar, x):
        return vae_loss_forward(x_pred, mu, logvar, x, self.current_beta)

    __call__ = forward


# ----------------------------- main -----------------------------------------

if __name__ == "__main__":
    # ---- case 1: tiny f32 shapes matching the module interface -------------
    batch, feat_c, feat_l, latent = 2, 8, 64, 16

    key = jax.random.PRNGKey(0)
    k1, k2, k3, k4 = jax.random.split(key, 4)
    x_pred = jax.random.normal(k1, (batch, feat_c, feat_l), jnp.float32)
    x = jax.random.normal(k2, (batch, feat_c, feat_l), jnp.float32)
    mu = 0.5 * jax.random.normal(k3, (batch, latent), jnp.float32)
    logvar = 0.5 * jax.random.normal(k4, (batch, latent), jnp.float32)

    loss_fn = VAELoss(beta=4.0, epoch_resets=10, num_resets=2)
    for _ in range(3):          # anneal a few steps so current_beta > 0
        loss_fn.update_beta()

    nll, weighted_kl = loss_fn(x_pred, mu, logvar, x)
    jax.block_until_ready((nll, weighted_kl))

    xp_f = x_pred.reshape(batch, -1)
    x_f = x.reshape(batch, -1)
    nll_ref = jnp.sum((xp_f - x_f) ** 2)
    kl_ref = jnp.mean(-0.5 * jnp.sum(1.0 + logvar - mu ** 2 - jnp.exp(logvar), axis=1))
    wkl_ref = loss_fn.current_beta * kl_ref

    assert nll.shape == () and weighted_kl.shape == ()
    assert jnp.all(jnp.isfinite(nll)) and jnp.all(jnp.isfinite(weighted_kl))
    assert jnp.allclose(nll, nll_ref, rtol=1e-5, atol=1e-5)
    assert jnp.allclose(weighted_kl, wkl_ref, rtol=1e-5, atol=1e-5)

    # ---- case 2: bf16 inputs + forced row tiling (exercises the grid path) --
    batch2 = 64
    j1, j2, j3, j4 = jax.random.split(jax.random.PRNGKey(1), 4)
    xp_b = jax.random.normal(j1, (batch2, feat_c, feat_l), jnp.float32).astype(jnp.bfloat16)
    x_b = jax.random.normal(j2, (batch2, feat_c, feat_l), jnp.float32).astype(jnp.bfloat16)
    mu_b = (0.5 * jax.random.normal(j3, (batch2, latent), jnp.float32)).astype(jnp.bfloat16)
    lv_b = (0.5 * jax.random.normal(j4, (batch2, latent), jnp.float32)).astype(jnp.bfloat16)

    nll2, wkl2 = vae_loss_forward(xp_b, mu_b, lv_b, x_b, loss_fn.current_beta,
                                  tile_rows=8)      # grid=(8,) -> multi-step accumulation
    jax.block_until_ready((nll2, wkl2))

    xpf = xp_b.astype(jnp.float32).reshape(batch2, -1)
    xf = x_b.astype(jnp.float32).reshape(batch2, -1)
    muf = mu_b.astype(jnp.float32)
    lvf = lv_b.astype(jnp.float32)
    nll2_ref = jnp.sum((xpf - xf) ** 2)
    kl2_ref = jnp.mean(-0.5 * jnp.sum(1.0 + lvf - muf ** 2 - jnp.exp(lvf), axis=1))
    wkl2_ref = loss_fn.current_beta * kl2_ref

    assert jnp.allclose(nll2, nll2_ref, rtol=1e-4, atol=1e-3)
    assert jnp.allclose(wkl2, wkl2_ref, rtol=1e-4, atol=1e-3)

    print("KERNEL_OK")
</pallas_src>

<mosaic_0001>
module attributes {stable_mosaic.version = 11 : i64} {
  func.func @_vae_loss_kernel(%arg0: i32, %arg1: memref<2x512xf32, #tpu.memory_space<vmem>>, %arg2: memref<2x512xf32, #tpu.memory_space<vmem>>, %arg3: memref<2x16xf32, #tpu.memory_space<vmem>>, %arg4: memref<2x16xf32, #tpu.memory_space<vmem>>, %arg5: memref<1xf32, #tpu.memory_space<smem>>, %arg6: memref<1x1xf32, #tpu.memory_space<vmem>>, %arg7: memref<1x1xf32, #tpu.memory_space<vmem>>) attributes {dimension_semantics = [#tpu.dimension_semantics<arbitrary>], iteration_bounds = array<i64: 1>, scalar_prefetch = 0 : i64, scratch_operands = 0 : i64, tpu.core_type = #tpu.core_type<tc>, window_params = [{transform_indices = @transform_0, window_bounds = array<i64: 2, 512>}, {transform_indices = @transform_1, window_bounds = array<i64: 2, 512>}, {pipeline_mode = #tpu.pipeline_mode<synchronous>, transform_indices = @transform_2, window_bounds = array<i64: 2, 16>}, {pipeline_mode = #tpu.pipeline_mode<synchronous>, transform_indices = @transform_3, window_bounds = array<i64: 2, 16>}, {transform_indices = @transform_4, window_bounds = array<i64: 1>}, {pipeline_mode = #tpu.pipeline_mode<synchronous>, transform_indices = @transform_5, window_bounds = array<i64: 1, 1>}, {pipeline_mode = #tpu.pipeline_mode<synchronous>, transform_indices = @transform_6, window_bounds = array<i64: 1, 1>}]} {
    %c0_i32 = arith.constant 0 : i32
    %0 = arith.cmpi eq, %arg0, %c0_i32 : i32
    %1 = arith.extui %0 : i1 to i32
    %c0_i32_0 = arith.constant 0 : i32
    %2 = arith.cmpi ne, %1, %c0_i32_0 : i32
    scf.if %2 {
      %cst_10 = arith.constant 0.000000e+00 : f32
      %18 = vector.broadcast %cst_10 : f32 to vector<1x1xf32>
      %c0_11 = arith.constant 0 : index
      %c0_12 = arith.constant 0 : index
      %19 = vector.load %arg6[%c0_11, %c0_12] : memref<1x1xf32, #tpu.memory_space<vmem>>, vector<1x1xf32>
      tpu.vector_store %arg6[%c0_11, %c0_12], %18 {strides = array<i32>} : memref<1x1xf32, #tpu.memory_space<vmem>>, vector<1x1xf32>,
      %cst_13 = arith.constant 0.000000e+00 : f32
      %20 = vector.broadcast %cst_13 : f32 to vector<1x1xf32>
      %c0_14 = arith.constant 0 : index
      %c0_15 = arith.constant 0 : index
      %21 = vector.load %arg7[%c0_14, %c0_15] : memref<1x1xf32, #tpu.memory_space<vmem>>, vector<1x1xf32>
      tpu.vector_store %arg7[%c0_14, %c0_15], %20 {strides = array<i32>} : memref<1x1xf32, #tpu.memory_space<vmem>>, vector<1x1xf32>,
    } else {
    }
    %c0 = arith.constant 0 : index
    %c0_1 = arith.constant 0 : index
    %3 = vector.load %arg1[%c0, %c0_1] : memref<2x512xf32, #tpu.memory_space<vmem>>, vector<2x512xf32>
    %c0_2 = arith.constant 0 : index
    %c0_3 = arith.constant 0 : index
    %4 = vector.load %arg2[%c0_2, %c0_3] : memref<2x512xf32, #tpu.memory_space<vmem>>, vector<2x512xf32>
    %5 = arith.subf %3, %4 : vector<2x512xf32>
    %c0_4 = arith.constant 0 : index
    %c0_5 = arith.constant 0 : index
    %6 = vector.load %arg6[%c0_4, %c0_5] : memref<1x1xf32, #tpu.memory_space<vmem>>, vector<1x1xf32>
    %7 = arith.mulf %5, %5 : vector<2x512xf32>
    %8 = vector.shape_cast %7 : vector<2x512xf32> to vector<1x2x512xf32>
    %cst = arith.constant dense<0.000000e+00> : vector<1xf32>
    %9 = vector.multi_reduction <add>, %8, %cst [1, 2] : vector<1x2x512xf32> to vector<1xf32>
    %10 = vector.shape_cast %9 : vector<1xf32> to vector<1x1x1xf32>
    %11 = vector.extract %10[0, 0, 0] : f32 from vector<1x1x1xf32>
    %12 = vector.broadcast %11 : f32 to vector<1x1xf32>
    %13 = arith.addf %6, %12 : vector<1x1xf32>
    %c0_6 = arith.constant 0 : index
    %c0_7 = arith.constant 0 : index
    %14 = vector.load %arg6[%c0_6, %c0_7] : memref<1x1xf32, #tpu.memory_space<vmem>>, vector<1x1xf32>
    tpu.vector_store %arg6[%c0_6, %c0_7], %13 {strides = array<i32>} : memref<1x1xf32, #tpu.memory_space<vmem>>, vector<1x1xf32>,
    %c0_i32_8 = arith.constant 0 : i32
    %15 = arith.cmpi eq, %arg0, %c0_i32_8 : i32
    %16 = arith.extui %15 : i1 to i32
    %c0_i32_9 = arith.constant 0 : i32
    %17 = arith.cmpi ne, %16, %c0_i32_9 : i32
    scf.if %17 {
      %c0_10 = arith.constant 0 : index
      %c0_11 = arith.constant 0 : index
      %18 = vector.load %arg3[%c0_10, %c0_11] : memref<2x16xf32, #tpu.memory_space<vmem>>, vector<2x16xf32>
      %c0_12 = arith.constant 0 : index
      %c0_13 = arith.constant 0 : index
      %19 = vector.load %arg4[%c0_12, %c0_13] : memref<2x16xf32, #tpu.memory_space<vmem>>, vector<2x16xf32>
      %cst_14 = arith.constant 1.000000e+00 : f32
      %20 = vector.broadcast %cst_14 : f32 to vector<2x16xf32>
      %21 = arith.addf %20, %19 : vector<2x16xf32>
      %22 = arith.mulf %18, %18 : vector<2x16xf32>
      %23 = arith.subf %21, %22 : vector<2x16xf32>
      %24 = math.exp %19 : vector<2x16xf32>
      %25 = arith.subf %23, %24 : vector<2x16xf32>
      %cst_15 = arith.constant dense<0.000000e+00> : vector<2xf32>
      %26 = vector.multi_reduction <add>, %25, %cst_15 [1] : vector<2x16xf32> to vector<2xf32>
      %27 = vector.shape_cast %26 : vector<2xf32> to vector<2x1xf32>
      %28 = vector.shape_cast %27 : vector<2x1xf32> to vector<1x2x1xf32>
      %cst_16 = arith.constant dense<0.000000e+00> : vector<1xf32>
      %29 = vector.multi_reduction <add>, %28, %cst_16 [1, 2] : vector<1x2x1xf32> to vector<1xf32>
      %30 = vector.shape_cast %29 : vector<1xf32> to vector<1x1x1xf32>
      %31 = vector.extract %30[0, 0, 0] : f32 from vector<1x1x1xf32>
      %32 = vector.broadcast %31 : f32 to vector<1x1xf32>
      %cst_17 = arith.constant -2.500000e-01 : f32
      %33 = vector.broadcast %cst_17 : f32 to vector<1x1xf32>
      %34 = arith.mulf %33, %32 : vector<1x1xf32>
      %c0_18 = arith.constant 0 : index
      %35 = memref.load %arg5[%c0_18] : memref<1xf32, #tpu.memory_space<smem>>
      %36 = vector.broadcast %35 : f32 to vector<1x1xf32>
      %37 = arith.mulf %36, %34 : vector<1x1xf32>
      %c0_19 = arith.constant 0 : index
      %c0_20 = arith.constant 0 : index
      %38 = vector.load %arg7[%c0_19, %c0_20] : memref<1x1xf32, #tpu.memory_space<vmem>>, vector<1x1xf32>
      tpu.vector_store %arg7[%c0_19, %c0_20], %37 {strides = array<i32>} : memref<1x1xf32, #tpu.memory_space<vmem>>, vector<1x1xf32>,
    } else {
    }
    return
  }
  func.func @transform_0(%arg0: i32) -> (i32, i32) {
    %c0_i32 = arith.constant 0 : i32
    %c0_i32_0 = arith.constant 0 : i32
    return %arg0, %c0_i32 : i32, i32
  }
  func.func @transform_1(%arg0: i32) -> (i32, i32) {
    %c0_i32 = arith.constant 0 : i32
    %c0_i32_0 = arith.constant 0 : i32
    return %arg0, %c0_i32 : i32, i32
  }
  func.func @transform_2(%arg0: i32) -> (i32, i32) {
    %c0_i32 = arith.constant 0 : i32
    %c0_i32_0 = arith.constant 0 : i32
    %c0_i32_1 = arith.constant 0 : i32
    return %c0_i32, %c0_i32_0 : i32, i32
  }
  func.func @transform_3(%arg0: i32) -> (i32, i32) {
    %c0_i32 = arith.constant 0 : i32
    %c0_i32_0 = arith.constant 0 : i32
    %c0_i32_1 = arith.constant 0 : i32
    return %c0_i32, %c0_i32_0 : i32, i32
  }
  func.func @transform_4(%arg0: i32) -> i32 {
    %c0_i32 = arith.constant 0 : i32
    %c0_i32_0 = arith.constant 0 : i32
    return %c0_i32 : i32
  }
  func.func @transform_5(%arg0: i32) -> (i32, i32) {
    %c0_i32 = arith.constant 0 : i32
    %c0_i32_0 = arith.constant 0 : i32
    %c0_i32_1 = arith.constant 0 : i32
    return %c0_i32, %c0_i32_0 : i32, i32
  }
  func.func @transform_6(%arg0: i32) -> (i32, i32) {
    %c0_i32 = arith.constant 0 : i32
    %c0_i32_0 = arith.constant 0 : i32
    %c0_i32_1 = arith.constant 0 : i32
    return %c0_i32, %c0_i32_0 : i32, i32
  }
}

</mosaic_0001>

<bundles_post_ra>
// kernel: vae_loss_forward.1
= control target key start
LH: loop header
LB: loop body
LE: loop exit
PB: predicated region body
PF: predicated region fallthrough
CT: control target
= control target key end

     0   :  { %13 = vsyncpa [#allocation4], 0  ;;  %v42_v2 = vlaneseq  ;;  %v198_v6 = vmov 1983009808   ;;  %s280_s0 = inlined_call_operand.vmem [shape: f32[2,512], index: 0, kind: input, shape index: {}]   ;;  %s281_s1 = inlined_call_operand.vmem [shape: f32[2,512], index: 1, kind: input, shape index: {}]   ;;  %s282_s2 = inlined_call_operand.vmem [shape: f32[2,16], index: 2, kind: input, shape index: {}]   ;;  %s283_s3 = inlined_call_operand.vmem [shape: f32[2,16], index: 3, kind: input, shape index: {}]   ;;  %s284_s4 = inlined_call_operand.<no memory space> [shape: f32[1], index: 4, kind: input, shape index: {}]   ;;  %s285_s5 = inlined_call_operand.hbm [shape: f32[1,1], index: 5, kind: output, shape index: {0}]   ;;  %s286_s6 = inlined_call_operand.hbm [shape: f32[1,1], index: 6, kind: output, shape index: {1}]  }
   0x1   :  { %v84_v0 = vld [vmem:[%s283_s3] sm:$0x3]  ;;  %v40_v7 = vunpack.c.l.s4 %v198_v6 }
   0x2   :  { %v32_v1 = vld [vmem:[%s280_s0] sm:$0xff]  ;;  %v88_v3 = vmul.f32 1.442695, %v84_v0  ;;  %v43_v8 = vshrl.u32 %v42_v2, 7 }
   0x3   :  { %v33_v4 = vld [vmem:[%s281_s1] sm:$0xff] }
   0x4   :  { %v34_v5 = vsub.f32 %v32_v1, %v33_v4 }
   0x5   :  { %14 = vsyncpa [#allocation6], 0  ;;  %v83_v9 = vld [vmem:[%s282_s2] sm:$0x3]  ;;  %148 = vpow2.f32 %v88_v3  ;;  %v41_v11 = vunpack.c.0.s8 %v40_v7  ;;  %v85_v12 = vadd.f32 1.0, %v84_v0  ;;  %vm59_vm0 = vcmask 1041408  }
   0x6   :  { %v36_v10 = vmul.f32 %v34_v5, %v34_v5  ;;  %v86_v13 = vmul.f32 %v83_v9, %v83_v9  ;;  %vm91_vm1 = vcmask 123904   ;;  %vm95_vm2 = vcmask 1024   ;;  %s200_s1 = smov [#allocation3]  }
   0x7   :  { %v44_v15 = vsub.s32 %v41_v11, %v43_v8  ;;  %vm29_vm3 = vcmask 0   ;;  %v199_v40 = vmov 0.0   ;;  %s118_s2 = sshll.u32 %s200_s1, 4  ;;  %s119_s2 = int_to_ptr.vmem [resolvable:$true] %s118_s2 }
   0x8   :  { %v38_v14 = vcombine.high %v36_v10, %v36_v10  ;;  %v87_v18 = vsub.f32 %v85_v12, %v86_v13  ;;  %30 = vst.msk [vmem:[#allocation3] sm:$0x1] %vm29_vm3, %v199_v40  ;;  %31 = vst.msk [vmem:[#allocation5] sm:$0x1] %vm29_vm3, %v199_v40  ;;  %s150_s3 = scalar_lea.vmem %s119_s2, 16  ;;  %s154_s29 = scalar_lea.vmem %s119_s2, 32 }
   0x9   :  { %v45_v16 = vrot.slane %v36_v10, %v44_v15  ;;  %p151_p0 = scmp.ne.s32.totalorder %s119_s2, %s150_s3  ;;  %p155_p1 = scmp.lt.s32.totalorder %s119_s2, %s119_s2 }
   0xa   :  { %v52_v17 = vrot.slane %v38_v14, %v44_v15  ;;  %p156_p2 = scmp.lt.s32.totalorder %s154_s29, %s150_s3 }
   0xb   :  { %v53_v19 = vcombine.high %v45_v16, %v45_v16  ;;  %v60_v21 = vsel %vm59_vm0, %v45_v16, 0.0 }
   0xc   :  { %v54_v20 = vcombine.high %v52_v17, %v52_v17  ;;  %v63_v23 = vsel %vm59_vm0, %v52_v17, 0.0  ;;  %p157_p3 = por %p156_p2, %p155_p1 }
   0xd   :  { %v61_v22 = vsel %vm59_vm0, %v53_v19, 0.0 }
   0xe   :  { %v62_v25 = vadd.f32 %v61_v22, %v60_v21  ;;  %v65_v27 = vsel %vm59_vm0, %v54_v20, 0.0  ;;  %p158_p4 = pnand %p157_p3, %p151_p0 }
   0xf   :  { %v149_v24 = vpop.eup %148  ;;  %v35_v41 = vld [vmem:[#allocation3] sm:$0x1] }
  0x10   :  { %v90_v26 = vsub.f32 %v87_v18, %v149_v24  ;;  %v64_v28 = vadd.f32 %v63_v23, %v62_v25 }
  0x12   :  { %v92_v29 = vsel %vm91_vm1, %v90_v26, 0.0  ;;  %v66_v30 = vadd.f32 %v65_v27, %v64_v28 }
  0x13   :  { %93 = vadd.xlane.f32.xlu0 %v92_v29 }
  0x17   :  { %67 = vadd.xlane.f32.xlu0 %v66_v30 }
  0xa0   :  { %v94_v31 = vpop.xlane.xlu0 %93 }
  0xa1   :  { %v96_v32 = vsel %vm95_vm2, %v94_v31, 0.0 }
  0xa2   :  { %97 = vadd.xlane.f32.xlu1 %v96_v32 }
  0xa4   :  { %v68_v33 = vpop.xlane.xlu0 %67 }
  0xa5   :  { %v69_v34 = vrot.slane %v68_v33, 4 }
  0xa7   :  { %v70_v35 = vadd.f32 %v69_v34, %v68_v33 }
  0xa9   :  { %v71_v36 = vrot.slane %v70_v35, 2 }
  0xab   :  { %v72_v37 = vadd.f32 %v71_v36, %v70_v35 }
  0xad   :  { %v73_v38 = vrot.slane %v72_v37, 1 }
  0xaf   :  { %v74_v39 = vadd.f32 %v73_v38, %v72_v37 }
  0xb1   :  { %140 = vpush %v74_v39 }
  0xe2   :  { %s141_s0 = spop %140 }
  0xe3   :  { %v76_v42 = vstv %s141_s0 }
  0xe4   :  { %v77_v43 = vadd.f32 %v76_v42, %v35_v41 }
  0xe6   :  { %79 = vst.msk [vmem:[#allocation3] sm:$0x1] %vm29_vm3, %v77_v43 }
  0xe7   :  { %161 = shalt.err (!%p158_p4)
}
  0xe8   :  { %s162_s8 = scalar_lea.hbm %s285_s5, 16 }
  0xe9   :  { %p163_p5 = scmp.ne.s32.totalorder %s285_s5, %s162_s8  ;;  %p166_p6 = scmp.lt.u32.totalorder %s162_s8, %s285_s5 }
  0xeb   :  { %p168_p7 = pnand %p166_p6, %p163_p5 }
  0xed   :  { %171 = shalt.err (!%p168_p7)
}
  0xee   :  { %121 = dma.vmem_to_hbm [thread:$0]  %s119_s2, 16, %s285_s5, [#allocation4]   ;;  %v109_v52 = vstv %s284_s4 }
  0xef   :  { %s201_s18 = smov [#allocation5]  }
  0xf0   :  { %s128_s19 = sshll.u32 %s201_s18, 4  ;;  %s129_s19 = int_to_ptr.vmem [resolvable:$true] %s128_s19 }
  0xf1   :  { %s172_s5 = scalar_lea.vmem %s129_s19, 16  ;;  %s176_s20 = scalar_lea.vmem %s129_s19, 32 }
  0xf2   :  { %p173_p8 = scmp.ne.s32.totalorder %s129_s19, %s172_s5  ;;  %p177_p9 = scmp.lt.s32.totalorder %s129_s19, %s129_s19 }
  0xf3   :  { %p178_p10 = scmp.lt.s32.totalorder %s176_s20, %s172_s5 }
  0xf5   :  { %p179_p11 = por %p178_p10, %p177_p9 }
  0xf7   :  { %p180_p12 = pnand %p179_p11, %p173_p8 }
 0x12f   :  { %v98_v44 = vpop.xlane.xlu1 %97 }
 0x130   :  { %v99_v45 = vrot.slane %v98_v44, 4 }
 0x132   :  { %v100_v46 = vadd.f32 %v99_v45, %v98_v44 }
 0x134   :  { %v101_v47 = vrot.slane %v100_v46, 2 }
 0x136   :  { %v102_v48 = vadd.f32 %v101_v47, %v100_v46 }
 0x138   :  { %v103_v49 = vrot.slane %v102_v48, 1 }
 0x13a   :  { %v104_v50 = vadd.f32 %v103_v49, %v102_v48 }
 0x13c   :  { %142 = vpush %v104_v50 }
 0x16d   :  { %s143_s15 = spop %142 }
 0x16e   :  { %v106_v51 = vstv %s143_s15 }
 0x16f   :  { %v107_v53 = vmul.f32 -0.25, %v106_v51 }
 0x171   :  { %v110_v54 = vmul.f32 %v109_v52, %v107_v53 }
 0x173   :  { %111 = vst.msk [vmem:[#allocation5] sm:$0x1] %vm29_vm3, %v110_v54 }
 0x174   :  { %183 = shalt.err (!%p180_p12)
}
 0x175   :  { %s184_s23 = scalar_lea.hbm %s286_s6, 16 }
 0x176   :  { %p185_p13 = scmp.ne.s32.totalorder %s286_s6, %s184_s23  ;;  %p188_p0 = scmp.lt.u32.totalorder %s184_s23, %s286_s6 }
 0x178   :  { %p190_p1 = pnand %p188_p0, %p185_p13 }
 0x17a   :  { %193 = shalt.err (!%p190_p1)
}
 0x17b   :  { %131 = dma.vmem_to_hbm [thread:$0]  %s129_s19, 16, %s286_s6, [#allocation6]  }
 0x17c   :  { %194 = dma.done.wait [#allocation4], 16  }
 0x17d   :  { %195 = vsyncadd [#allocation4], 4294967280 }
 0x17e   :  { %196 = dma.done.wait [#allocation6], 16  }
 0x17f   :  { %197 = vsyncadd [#allocation6], 4294967280 }
 0x180   :  { %138 = vsyncpa [#allocation4], 1 }
 0x181   :  { %139 = vsyncpa [#allocation6], 1 }

</bundles_post_ra>
